<compile_context>
chip_gen: v5e
topology: v5e:2x2
jax: 0.10.0
libtpu: 0.0.40
codegen_flags: <defaults>
</compile_context>

<pallas_src>
import jax
import jax.numpy as jnp
from jax import lax
from jax.experimental import pallas as pl
from jax.experimental.pallas import tpu as pltpu


def _hnn_mlp_kernel(x_ref, w1_ref, b1_ref, w2_ref, b2_ref, w3_ref, ot_ref):
    """One batch tile. x_ref is (TB, D) native layout; output (O, TB) lane-dense."""
    cdt = w1_ref.dtype  # MXU compute dtype; accumulation stays f32

    # Native (TB, D) tile; cast in-kernel (no wrapper-side relayout pass).
    xt = x_ref[...].astype(cdt)

    # layer 1: contract the D axis of W1 (H, D) with the D axis of x (TB, D)
    # -> (H, TB); no explicit transpose of x materializes.
    h = jnp.tanh(
        lax.dot_general(
            w1_ref[...], xt,
            dimension_numbers=(((1,), (1,)), ((), ())),
            preferred_element_type=jnp.float32,
        )
        + b1_ref[...]
    )
    # layer 2: (H, H) @ (H, TB)
    h = jnp.tanh(
        jnp.dot(w2_ref[...], h.astype(cdt), preferred_element_type=jnp.float32)
        + b2_ref[...]
    )
    # layer 3 (no bias): (O, H) @ (H, TB) -> lane-dense (O, TB) output tile
    yt = jnp.dot(w3_ref[...], h.astype(cdt), preferred_element_type=jnp.float32)
    ot_ref[...] = yt.astype(ot_ref.dtype)


def _round_up(n, m):
    return ((n + m - 1) // m) * m


def _pick_tile(B, tb_max):
    """Batch-tile width: big to amortize per-step overhead, but >=4 grid steps
    for large B so both v7x TensorCores are used (no-op on v5e/v6e)."""
    if B <= 1024:
        return B                         # single exact tile
    tb = _round_up(pl.cdiv(B, 4), 128)   # aim for >= 4 grid steps
    return max(1024, min(tb, tb_max))


def hnn_forward(x, params, *, tb=None, tb_max=16384,
                compute_dtype=jnp.bfloat16, xla_fallback_below=0):
    """HNN forward pass. Returns (F1, F2), each (B, 1), like y.split(1, dim=1).

    tb: explicit batch-tile override (multiple of 128, or == B).
    xla_fallback_below: if B is below this, skip the Pallas call and let XLA run
        the three tiny matmuls (kernel launch dominates at tiny B). Disabled by
        default so tests exercise the kernel.
    """
    w1, b1, w2, b2, w3 = params          # PyTorch orientation: W (out, in); b (out, 1)
    B, D = x.shape
    H, O = w1.shape[0], w3.shape[0]

    if B < xla_fallback_below:
        return _hnn_forward_ref(x, params, compute_dtype)

    # One-time tiny casts (weights are resident; HBM cost is negligible and
    # does not scale with B).  x itself is streamed in its native dtype.
    w1c, w2c, w3c = (w.astype(compute_dtype) for w in (w1, w2, w3))
    b1c, b2c = b1.astype(jnp.float32), b2.astype(jnp.float32)

    TB = tb if tb is not None else _pick_tile(B, tb_max)
    grid = (pl.cdiv(B, TB),)             # ragged last tile handled by block clipping

    stream = pl.BlockSpec((TB, D), lambda i: (i, 0))                # re-DMA'd per step
    resident = lambda shape: pl.BlockSpec(shape, lambda i: (0, 0))  # stays in VMEM

    out_itemsize = jnp.dtype(x.dtype).itemsize
    bytes_accessed = int(
        x.size * x.dtype.itemsize
        + sum(a.size * a.dtype.itemsize for a in (w1c, b1c, w2c, b2c, w3c))
        + B * O * out_itemsize
    )

    yt = pl.pallas_call(
        _hnn_mlp_kernel,
        out_shape=jax.ShapeDtypeStruct((O, B), x.dtype),
        grid_spec=pltpu.PrefetchScalarGridSpec(
            num_scalar_prefetch=0,
            grid=grid,
            in_specs=[
                stream,               # x (TB, D) block, streamed over batch
                resident((H, D)),     # W1
                resident((H, 1)),     # b1
                resident((H, H)),     # W2
                resident((H, 1)),     # b2
                resident((O, H)),     # W3
            ],
            out_specs=pl.BlockSpec((O, TB), lambda i: (0, i)),
        ),
        compiler_params=pltpu.CompilerParams(
            dimension_semantics=("parallel",),        # megacore sharding on v7x
            vmem_limit_bytes=32 * 1024 * 1024,
        ),
        cost_estimate=pl.CostEstimate(
            flops=2 * B * (D * H + H * H + H * O),
            transcendentals=2 * B * H,
            bytes_accessed=bytes_accessed,
        ),
    )(x, w1c, b1c, w2c, b2c, w3c)

    # y.split(1, dim=1) -> two (B, 1) arrays; contiguous row slices of (2, B),
    # no (2,B)->(B,2) transpose pass.
    return yt[0, :].reshape(B, 1), yt[1, :].reshape(B, 1)


def init_hnn_params(key, input_dim, hidden_dim, output_dim=2, dtype=jnp.float32):
    """Parameters matching DifferentiableModel.__init__ shapes.

    Weights are kept in PyTorch (out_features, in_features) orientation (the
    transposed-layout kernel consumes them directly) and orthogonal-initialized.
    Biases are (out, 1); zero-init here for determinism (PyTorch default is
    uniform -- load real values for exact parity with a torch checkpoint).
    """
    k1, k2, k3 = jax.random.split(key, 3)
    ortho = jax.nn.initializers.orthogonal()
    w1 = ortho(k1, (hidden_dim, input_dim), dtype)
    w2 = ortho(k2, (hidden_dim, hidden_dim), dtype)
    w3 = ortho(k3, (output_dim, hidden_dim), dtype)
    b1 = jnp.zeros((hidden_dim, 1), dtype)
    b2 = jnp.zeros((hidden_dim, 1), dtype)
    return (w1, b1, w2, b2, w3)


def _hnn_forward_ref(x, params, compute_dtype=jnp.bfloat16):
    """Pure-JAX reference emulating the kernel's low-precision-in / f32-acc math."""
    w1, b1, w2, b2, w3 = params
    q = lambda a: a.astype(compute_dtype).astype(jnp.float32)
    h = jnp.tanh(q(x) @ q(w1).T + b1.reshape(1, -1).astype(jnp.float32))
    h = jnp.tanh(q(h) @ q(w2).T + b2.reshape(1, -1).astype(jnp.float32))
    y = q(h) @ q(w3).T
    return y[:, 0:1], y[:, 1:2]


if __name__ == "__main__":
    input_dim, hidden_dim, output_dim = 4, 32, 2

    key = jax.random.PRNGKey(0)
    kx, kx2, kp = jax.random.split(key, 3)
    params = init_hnn_params(kp, input_dim, hidden_dim, output_dim)

    # Small single-tile case (grid=(1,)), the module's typical call shape.
    batch = 8
    x = jax.random.normal(kx, (batch, input_dim), dtype=jnp.float32)
    f1, f2 = hnn_forward(x, params)
    f1 = jax.block_until_ready(f1)
    f2 = jax.block_until_ready(f2)
    r1, r2 = _hnn_forward_ref(x, params)
    assert f1.shape == (batch, 1) and f2.shape == (batch, 1)
    assert jnp.allclose(f1, r1, atol=2e-3, rtol=2e-3), (f1, r1)
    assert jnp.allclose(f2, r2, atol=2e-3, rtol=2e-3), (f2, r2)

    # Multi-step grid case (exercises the streamed-x / resident-weight path).
    batch2 = 384
    x2 = jax.random.normal(kx2, (batch2, input_dim), dtype=jnp.float32)
    g1, g2 = hnn_forward(x2, params, tb=128)
    g1 = jax.block_until_ready(g1)
    g2 = jax.block_until_ready(g2)
    s1, s2 = _hnn_forward_ref(x2, params)
    assert g1.shape == (batch2, 1) and g2.shape == (batch2, 1)
    assert jnp.allclose(g1, s1, atol=2e-3, rtol=2e-3), (g1, s1)
    assert jnp.allclose(g2, s2, atol=2e-3, rtol=2e-3), (g2, s2)

    print("KERNEL_OK")
</pallas_src>

<mosaic_0001>
module attributes {stable_mosaic.version = 11 : i64} {
  func.func @_hnn_mlp_kernel(%arg0: i32, %arg1: memref<8x4xf32, #tpu.memory_space<vmem>>, %arg2: memref<32x4xbf16, #tpu.memory_space<vmem>>, %arg3: memref<32x1xf32, #tpu.memory_space<vmem>>, %arg4: memref<32x32xbf16, #tpu.memory_space<vmem>>, %arg5: memref<32x1xf32, #tpu.memory_space<vmem>>, %arg6: memref<2x32xbf16, #tpu.memory_space<vmem>>, %arg7: memref<2x8xf32, #tpu.memory_space<vmem>>) attributes {dimension_semantics = [#tpu.dimension_semantics<parallel>], iteration_bounds = array<i64: 1>, scalar_prefetch = 0 : i64, scratch_operands = 0 : i64, tpu.core_type = #tpu.core_type<tc>, window_params = [{transform_indices = @transform_0, window_bounds = array<i64: 8, 4>}, {pipeline_mode = #tpu.pipeline_mode<synchronous>, transform_indices = @transform_1, window_bounds = array<i64: 32, 4>}, {pipeline_mode = #tpu.pipeline_mode<synchronous>, transform_indices = @transform_2, window_bounds = array<i64: 32, 1>}, {pipeline_mode = #tpu.pipeline_mode<synchronous>, transform_indices = @transform_3, window_bounds = array<i64: 32, 32>}, {pipeline_mode = #tpu.pipeline_mode<synchronous>, transform_indices = @transform_4, window_bounds = array<i64: 32, 1>}, {pipeline_mode = #tpu.pipeline_mode<synchronous>, transform_indices = @transform_5, window_bounds = array<i64: 2, 32>}, {transform_indices = @transform_6, window_bounds = array<i64: 2, 8>}]} {
    %c0 = arith.constant 0 : index
    %c0_0 = arith.constant 0 : index
    %0 = vector.load %arg1[%c0, %c0_0] : memref<8x4xf32, #tpu.memory_space<vmem>>, vector<8x4xf32>
    %1 = arith.truncf %0 : vector<8x4xf32> to vector<8x4xbf16>
    %c0_1 = arith.constant 0 : index
    %c0_2 = arith.constant 0 : index
    %2 = vector.load %arg2[%c0_1, %c0_2] : memref<32x4xbf16, #tpu.memory_space<vmem>>, vector<32x4xbf16>
    %cst = arith.constant dense<0.000000e+00> : vector<32x8xf32>
    %3 = tpu.matmul %2, %1, %cst {dimension_numbers = #tpu.dot_dimension_numbers<[1], [1], [0], [0], [0, 0, 1, 0], [], []>} : vector<32x4xbf16>, vector<8x4xbf16>, vector<32x8xf32> -> vector<32x8xf32>
    %c0_3 = arith.constant 0 : index
    %c0_4 = arith.constant 0 : index
    %4 = vector.load %arg3[%c0_3, %c0_4] : memref<32x1xf32, #tpu.memory_space<vmem>>, vector<32x1xf32>
    %5 = vector.broadcast %4 : vector<32x1xf32> to vector<32x8xf32>
    %6 = arith.addf %3, %5 : vector<32x8xf32>
    %7 = math.tanh %6 : vector<32x8xf32>
    %c0_5 = arith.constant 0 : index
    %c0_6 = arith.constant 0 : index
    %8 = vector.load %arg4[%c0_5, %c0_6] : memref<32x32xbf16, #tpu.memory_space<vmem>>, vector<32x32xbf16>
    %9 = arith.truncf %7 : vector<32x8xf32> to vector<32x8xbf16>
    %cst_7 = arith.constant dense<0.000000e+00> : vector<32x8xf32>
    %10 = tpu.matmul %8, %9, %cst_7 {dimension_numbers = #tpu.dot_dimension_numbers<[1], [0], [0], [1], [0, 0, 1, 1], [], []>} : vector<32x32xbf16>, vector<32x8xbf16>, vector<32x8xf32> -> vector<32x8xf32>
    %c0_8 = arith.constant 0 : index
    %c0_9 = arith.constant 0 : index
    %11 = vector.load %arg5[%c0_8, %c0_9] : memref<32x1xf32, #tpu.memory_space<vmem>>, vector<32x1xf32>
    %12 = vector.broadcast %11 : vector<32x1xf32> to vector<32x8xf32>
    %13 = arith.addf %10, %12 : vector<32x8xf32>
    %14 = math.tanh %13 : vector<32x8xf32>
    %c0_10 = arith.constant 0 : index
    %c0_11 = arith.constant 0 : index
    %15 = vector.load %arg6[%c0_10, %c0_11] : memref<2x32xbf16, #tpu.memory_space<vmem>>, vector<2x32xbf16>
    %16 = arith.truncf %14 : vector<32x8xf32> to vector<32x8xbf16>
    %cst_12 = arith.constant dense<0.000000e+00> : vector<2x8xf32>
    %17 = tpu.matmul %15, %16, %cst_12 {dimension_numbers = #tpu.dot_dimension_numbers<[1], [0], [0], [1], [0, 0, 1, 1], [], []>} : vector<2x32xbf16>, vector<32x8xbf16>, vector<2x8xf32> -> vector<2x8xf32>
    %c0_13 = arith.constant 0 : index
    %c0_14 = arith.constant 0 : index
    %18 = vector.load %arg7[%c0_13, %c0_14] : memref<2x8xf32, #tpu.memory_space<vmem>>, vector<2x8xf32>
    tpu.vector_store %arg7[%c0_13, %c0_14], %17 {strides = array<i32>} : memref<2x8xf32, #tpu.memory_space<vmem>>, vector<2x8xf32>,
    return
  }
  func.func @transform_0(%arg0: i32) -> (i32, i32) {
    %c0_i32 = arith.constant 0 : i32
    %c0_i32_0 = arith.constant 0 : i32
    return %arg0, %c0_i32 : i32, i32
  }
  func.func @transform_1(%arg0: i32) -> (i32, i32) {
    %c0_i32 = arith.constant 0 : i32
    %c0_i32_0 = arith.constant 0 : i32
    %c0_i32_1 = arith.constant 0 : i32
    return %c0_i32, %c0_i32_0 : i32, i32
  }
  func.func @transform_2(%arg0: i32) -> (i32, i32) {
    %c0_i32 = arith.constant 0 : i32
    %c0_i32_0 = arith.constant 0 : i32
    %c0_i32_1 = arith.constant 0 : i32
    return %c0_i32, %c0_i32_0 : i32, i32
  }
  func.func @transform_3(%arg0: i32) -> (i32, i32) {
    %c0_i32 = arith.constant 0 : i32
    %c0_i32_0 = arith.constant 0 : i32
    %c0_i32_1 = arith.constant 0 : i32
    return %c0_i32, %c0_i32_0 : i32, i32
  }
  func.func @transform_4(%arg0: i32) -> (i32, i32) {
    %c0_i32 = arith.constant 0 : i32
    %c0_i32_0 = arith.constant 0 : i32
    %c0_i32_1 = arith.constant 0 : i32
    return %c0_i32, %c0_i32_0 : i32, i32
  }
  func.func @transform_5(%arg0: i32) -> (i32, i32) {
    %c0_i32 = arith.constant 0 : i32
    %c0_i32_0 = arith.constant 0 : i32
    %c0_i32_1 = arith.constant 0 : i32
    return %c0_i32, %c0_i32_0 : i32, i32
  }
  func.func @transform_6(%arg0: i32) -> (i32, i32) {
    %c0_i32 = arith.constant 0 : i32
    %c0_i32_0 = arith.constant 0 : i32
    return %c0_i32, %arg0 : i32, i32
  }
}

</mosaic_0001>

<bundles_post_ra>
// kernel: tpu_custom_call.1
= control target key start
LH: loop header
LB: loop body
LE: loop exit
PB: predicated region body
PF: predicated region fallthrough
CT: control target
= control target key end

     0   :  { %vm65_vm0 = vcmask 31744   ;;  %v278_v3 = vmov 0   ;;  %s366_s0 = inlined_call_operand.vmem [shape: f32[8,4], index: 0, kind: input, shape index: {}]   ;;  %s367_s1 = inlined_call_operand.vmem [shape: bf16[32,4], index: 1, kind: input, shape index: {}]   ;;  %s368_s2 = inlined_call_operand.vmem [shape: f32[32,1], index: 2, kind: input, shape index: {}]   ;;  %s369_s3 = inlined_call_operand.vmem [shape: bf16[32,32], index: 3, kind: input, shape index: {}]   ;;  %s370_s4 = inlined_call_operand.vmem [shape: f32[32,1], index: 4, kind: input, shape index: {}]   ;;  %s371_s5 = inlined_call_operand.vmem [shape: bf16[2,32], index: 5, kind: input, shape index: {}]   ;;  %s372_s6 = inlined_call_operand.hbm [shape: f32[2,8], index: 6, kind: output, shape index: {}]  }
   0x1   :  { %v25_v0 = vld [vmem:[%s366_s0] sm:$0xff]  ;;  %v33_v1 = vld [vmem:[%s368_s2 + $0x10] sm:$0xff]  ;;  %233 = vset.pattern.permute.xlu0 %v278_v3  ;;  %234 = vset.pattern.permute.xlu1 %v278_v3 }
   0x2   :  { %v26_v2 = vpack.c.bf16 %v25_v0, %v25_v0  ;;  %v31_v4 = vld [vmem:[%s368_s2] sm:$0xff]  ;;  %47 = vperm.xlu0 %233, %v33_v1   ;;  %235 = vset.pattern.permute.xlu2 %v278_v3 }
   0x3   :  { %37 = vperm.xlu1 %234, %v31_v4  }
   0x4   :  { %v73_v5 = vsel %vm65_vm0, %v26_v2, 0 }
   0x5   :  { %11 = vsyncpa [#allocation3], 0  ;;  %230 = vmatpush.bf16.xpose.msra.mxu3 %v73_v5  ;;  %82 = vmatpush.bf16.xpose.msra.mxu0 %v73_v5  ;;  %v227_v6 = vld [vmem:[%s367_s1 + $0x8] sm:$0xff]  ;;  %v226_v7 = vld [vmem:[%s367_s1] sm:$0xff]  ;;  %vm138_vm1 = vcmask 261120   ;;  %s279_s20 = smov [#allocation2]  }
   0x6   :  { %v34_v8 = vld [vmem:[%s368_s2 + $0x18] sm:$0xff]  ;;  %v32_v9 = vld [vmem:[%s368_s2 + $0x8] sm:$0xff]  ;;  %v104_v10 = vld [vmem:[%s370_s4] sm:$0xff]  ;;  %s194_s21 = sshll.u32 %s279_s20, 4  ;;  %s196_s24 = sshll.u32 %s372_s6, 4  ;;  %vm187_vm2 = vcmask 58368   ;;  %s195_s21 = int_to_ptr.vmem [resolvable:$true] %s194_s21  ;;  %s197_s24 = int_to_ptr.hbm [resolvable:$true] %s196_s24 }
   0x7   :  { %v105_v11 = vld [vmem:[%s370_s4 + $0x8] sm:$0xff]  ;;  %v106_v24 = vld [vmem:[%s370_s4 + $0x10] sm:$0xff]  ;;  %v107_v27 = vld [vmem:[%s370_s4 + $0x18] sm:$0xff] }
   0x8   :  { %120 = vperm.xlu2 %235, %v106_v24   ;;  %v228_v32 = vld [vmem:[%s369_s3] sm:$0xff]  ;;  %v229_v33 = vld [vmem:[%s369_s3 + $0x8] sm:$0xff] }
   0x9   :  { %v168_v52 = vld [vmem:[%s371_s5] sm:$0x1] }
   0xa   :  { %52 = vperm.xlu0 %233, %v34_v8  }
   0xb   :  { %42 = vperm.xlu1 %234, %v32_v9  }
   0xc   :  { %214 = vmatmul.msk.bf16.vlgmr.msra.gmra.mxu3 %vm65_vm0, %v227_v6  ;;  %213 = vmatmul.msk.bf16.vlgmr.msra.gmra.mxu0 %vm65_vm0, %v226_v7 }
  0x10   :  { %125 = vperm.xlu2 %235, %v107_v27  }
  0x12   :  { %110 = vperm.xlu0 %233, %v104_v10  }
  0x13   :  { %115 = vperm.xlu1 %234, %v105_v11  }
  0x62   :  { %v121_v36 = vpop.permute.xlu2 %120 }
  0x6a   :  { %v126_v40 = vpop.permute.xlu2 %125 }
  0x74   :  { %v48_v13 = vpop.permute.xlu0 %47 }
  0x75   :  { %v38_v14 = vpop.permute.xlu1 %37 }
  0x7c   :  { %v53_v18 = vpop.permute.xlu0 %52 }
  0x7d   :  { %v43_v19 = vpop.permute.xlu1 %42 }
  0x84   :  { %v111_v44 = vpop.permute.xlu0 %110 }
  0x85   :  { %v116_v39 = vpop.permute.xlu1 %115 }
  0x89   :  { %v84_v12 = vpop.f32.mrf.mxu0 }
  0x8a   :  { %v85_v20 = vadd.f32 %v84_v12, %v38_v14 }
  0x8f   :  { %v89_v15 = vpop.f32.mrf.mxu3 }
  0x90   :  { %v90_v16 = vadd.f32 %v89_v15, %v48_v13 }
  0x91   :  { %v86_v17 = vpop.f32.mrf.mxu0 }
  0x92   :  { %v87_v22 = vadd.f32 %v86_v17, %v43_v19  ;;  %236 = vtanh.f32 %v90_v16 }
  0x97   :  { %v91_v21 = vpop.f32.mrf.mxu3 }
  0x98   :  { %v92_v23 = vadd.f32 %v91_v21, %v53_v18  ;;  %v237_v25 = vpop.eup %236 }
  0x9a   :  { %238 = vtanh.f32 %v92_v23 }
  0x9b   :  { %240 = vtanh.f32 %v85_v20 }
  0x9c   :  { %242 = vtanh.f32 %v87_v22 }
  0xa0   :  { %v239_v26 = vpop.eup %238 }
  0xa1   :  { %v241_v28 = vpop.eup %240  ;;  %v103_v29 = vpack.c.bf16 %v239_v26, %v237_v25 }
  0xa2   :  { %v243_v30 = vpop.eup %242 }
  0xa3   :  { %151 = vmatpush.bf16.msra.mxu1 %v103_v29  ;;  %v102_v31 = vpack.c.bf16 %v243_v30, %v241_v28 }
  0xa7   :  { %152 = vmatpush.bf16.msra.mxu1 %v102_v31 }
  0xaa   :  { %223 = vmatmul.msk.bf16.vlgmr.msra.gmra.mxu1 %vm138_vm1, %v228_v32 }
  0xba   :  { %224 = vmatmul.msk.bf16.gmra.mxu1 %vm138_vm1, %v229_v33 }
 0x127   :  { %v154_v34 = vpop.f32.mrf.mxu1 }
 0x128   :  { %v155_v45 = vadd.f32 %v154_v34, %v111_v44 }
 0x12f   :  { %v156_v35 = vpop.f32.mrf.mxu1 }
 0x130   :  { %v157_v42 = vadd.f32 %v156_v35, %v116_v39 }
 0x137   :  { %v159_v37 = vpop.f32.mrf.mxu1 }
 0x138   :  { %v160_v38 = vadd.f32 %v159_v37, %v121_v36 }
 0x13a   :  { %244 = vtanh.f32 %v160_v38 }
 0x13f   :  { %v161_v41 = vpop.f32.mrf.mxu1 }
 0x140   :  { %v162_v43 = vadd.f32 %v161_v41, %v126_v40  ;;  %v245_v46 = vpop.eup %244 }
 0x142   :  { %246 = vtanh.f32 %v162_v43 }
 0x143   :  { %248 = vtanh.f32 %v157_v42 }
 0x144   :  { %250 = vtanh.f32 %v155_v45 }
 0x148   :  { %v247_v47 = vpop.eup %246 }
 0x149   :  { %v170_v48 = vpack.c.bf16 %v247_v47, %v245_v46  ;;  %v249_v49 = vpop.eup %248 }
 0x14a   :  { %v251_v50 = vpop.eup %250 }
 0x14b   :  { %180 = vmatpush.bf16.msra.mxu2 %v170_v48  ;;  %v169_v51 = vpack.c.bf16 %v249_v49, %v251_v50 }
 0x14f   :  { %181 = vmatpush.bf16.msra.mxu2 %v169_v51 }
 0x152   :  { %225 = vmatmul.msk.bf16.vlgmr.msra.gmra.mxu2 %vm138_vm1, %v168_v52 }
 0x1d5   :  { %v183_v53 = vpop.f32.mrf.mxu2 }
 0x1d6   :  { %188 = vst.msk [vmem:[#allocation2] sm:$0x3] %vm187_vm2, %v183_v53 }
 0x1d7   :  { %199 = dma.vmem_to_hbm [thread:$0]  %s195_s21, 32, %s197_s24, [#allocation3]  }
 0x1dd   :  { %v185_v54 = vpop.f32.mrf.mxu2 }
 0x1de   :  { %276 = dma.done.wait [#allocation3], 32  }
 0x1df   :  { %277 = vsyncadd [#allocation3], 4294967264 }
 0x1e0   :  { %204 = vsyncpa [#allocation3], 1 }

</bundles_post_ra>
